<compile_context>
chip_gen: v7x
topology: tpu7x:2x2x1
jax: 0.10.0
libtpu: 0.0.40
codegen_flags: <defaults>
</compile_context>

<pallas_src>
import functools
import math

import jax
import jax.numpy as jnp
from jax import lax
from jax.experimental import pallas as pl
from jax.experimental.pallas import tpu as pltpu


def _round_up(a, b):
    return -(-a // b) * b


def _head_group_size(num_heads, head_dim):
    """Largest divisor g of num_heads with g*head_dim <= 128 (lane-dense grouping)."""
    g = 1
    for cand in range(1, num_heads + 1):
        if num_heads % cand == 0 and cand * head_dim <= 128:
            g = cand
    return g


# ---------------------------------------------------------------------------
# Kernel A: fused QKV projection + lane-dense head-group split.
# ---------------------------------------------------------------------------
def _qkv_proj_kernel(x_ref, w_ref, q_ref, k_ref, v_ref, *, groups, group_dim):
    """x_ref : (tt, E) bf16 rows of one (time-tile, batch) slice of the input.
    w_ref : (E, 3E) bf16 packed [Wq^T*scale | Wk^T | Wv^T]  (proj_bias is None).
    q/k/v_ref : (1, Hg, tt, Dg) bf16 head-grouped outputs (Dg = G*hd, lane-dense).
    """
    embed = groups * group_dim
    x = x_ref[...]                                                     # (tt, E) bf16
    qkv = jnp.dot(x, w_ref[...], preferred_element_type=jnp.float32)   # (tt, 3E) fp32
    # Lane-aligned slab stores (offsets are multiples of Dg, i.e. 128 in production).
    for p in range(groups):
        lo = p * group_dim
        q_ref[0, p] = qkv[:, lo:lo + group_dim].astype(q_ref.dtype)
        k_ref[0, p] = qkv[:, embed + lo:embed + lo + group_dim].astype(k_ref.dtype)
        v_ref[0, p] = qkv[:, 2 * embed + lo:2 * embed + lo + group_dim].astype(v_ref.dtype)


# ---------------------------------------------------------------------------
# Kernel B: flash attention (online softmax) + fused output projection.
# ---------------------------------------------------------------------------
def _flash_attn_kernel(q_ref, k_ref, v_ref, wo_t_ref, bo_ref, o_ref,
                       m_sc, l_sc, acc_sc, ctx_sc, *,
                       groups, group_size, head_dim, group_dim,
                       seq_len, kv_block, masked, bf16_exp):
    ki = pl.program_id(2)

    @pl.when(ki == 0)
    def _init():
        m_sc[...] = jnp.full_like(m_sc, -jnp.inf)
        l_sc[...] = jnp.zeros_like(l_sc)
        acc_sc[...] = jnp.zeros_like(acc_sc)

    qg = q_ref[0]                      # (Hg, tq, Dg) bf16, Q pre-scaled by 1/sqrt(hd)
    kg = k_ref[0]                      # (Hg, tk, Dg) bf16
    vg = v_ref[0]                      # (Hg, tk, Dg) bf16

    if masked:
        # Mask padded KV columns (zero-padded K rows would otherwise add exp(0-m) mass).
        col = ki * kv_block + lax.broadcasted_iota(jnp.int32, (1, 1, kv_block), 2)
        kv_valid = col < seq_len

    # Static loop over the heads packed inside each lane-dense group.
    for j in range(group_size):
        lo = j * head_dim
        qj = qg[:, :, lo:lo + head_dim]                               # (Hg, tq, hd)
        kj = kg[:, :, lo:lo + head_dim]                               # (Hg, tk, hd)
        vj = vg[:, :, lo:lo + head_dim]                               # (Hg, tk, hd)

        # Group-batched scores, fp32 accumulation on the MXU.
        s = jnp.einsum("gqd,gkd->gqk", qj, kj,
                       preferred_element_type=jnp.float32)            # (Hg, tq, tk)
        if masked:
            s = jnp.where(kv_valid, s, -jnp.inf)

        m_prev = m_sc[j]                                              # (Hg, tq, 1)
        m_new = jnp.maximum(m_prev, jnp.max(s, axis=-1, keepdims=True))
        alpha = jnp.exp(m_prev - m_new)
        x = s - m_new
        if bf16_exp:
            # bf16 exp on the EUP (v6e/v7x); denominator still accumulated in fp32.
            p = jnp.exp(x.astype(jnp.bfloat16))
            p_sum = jnp.sum(p, axis=-1, keepdims=True, dtype=jnp.float32)
        else:
            p_f32 = jnp.exp(x)
            p_sum = jnp.sum(p_f32, axis=-1, keepdims=True)
            p = p_f32.astype(jnp.bfloat16)

        l_sc[j] = alpha * l_sc[j] + p_sum
        acc_sc[j] = alpha * acc_sc[j] + jnp.einsum(
            "gqk,gkd->gqd", p, vj, preferred_element_type=jnp.float32)
        m_sc[j] = m_new

    @pl.when(ki == pl.num_programs(2) - 1)
    def _finalize():
        # Normalise with EUP approx reciprocal and merge heads into a lane-dense
        # (tq, E) staging buffer, one full 128-wide slab per head group.
        for pg in range(groups):
            parts = []
            for j in range(group_size):
                inv = pl.reciprocal(l_sc[j, pg], approx=True)          # (tq, 1)
                parts.append((acc_sc[j, pg] * inv).astype(ctx_sc.dtype))
            blk = parts[0] if group_size == 1 else jnp.concatenate(parts, axis=-1)
            ctx_sc[:, pg * group_dim:(pg + 1) * group_dim] = blk
        # Fused output projection (full K = E contraction) + bias.
        out = jnp.dot(ctx_sc[...], wo_t_ref[...],
                      preferred_element_type=jnp.float32)              # (tq, E) fp32
        o_ref[...] = (out + bo_ref[...]).astype(o_ref.dtype)


# ---------------------------------------------------------------------------
# VMEM footprint estimate for Kernel B (conservative; used for auto kv_tile).
# ---------------------------------------------------------------------------
def _flash_vmem_bytes(tq, tk, n_groups, group_dim, group_size, head_dim, E,
                      out_itemsize):
    lane = lambda n: _round_up(max(n, 1), 128)
    q_blk = 2 * n_groups * tq * lane(group_dim) * 2            # Q, double buffered, bf16
    kv_blk = 2 * 2 * n_groups * tk * lane(group_dim) * 2       # K + V, double buffered
    w_blk = E * lane(E) * 2 + 8 * lane(E) * 4                  # Wo^T (1 buf) + bias
    o_blk = 2 * tq * lane(E) * out_itemsize                    # output tile
    m_l = 2 * group_size * n_groups * tq * 128 * 4             # running max + denom
    acc = group_size * n_groups * tq * lane(head_dim) * 4      # running P@V accumulator
    ctx = tq * lane(E) * 2                                     # merged-head staging
    scores = group_size * n_groups * tq * tk * 6               # s fp32 + p bf16 (worst)
    return q_blk + kv_blk + w_blk + o_blk + m_l + acc + ctx + scores


# ---------------------------------------------------------------------------
# Wrapper
# ---------------------------------------------------------------------------
def whisper_attention(hidden_states_tbe, wq, wk, wv, wo, bo, *, num_heads,
                      t_tile=256, q_tile=128, kv_tile=None,
                      vmem_limit_bytes=None, bf16_exp=True):
    """hidden_states_tbe: (T, B, E), matching the module's 3-dim (encoder) branch.

    kv_tile=None / vmem_limit_bytes=None auto-configure from the chip's VMEM capacity:
    resident K/V (one KV step) on 128-MiB parts (v5e/v6e), bounded tiles on v7x (64 MiB).
    On v5e set bf16_exp=False (no bf16 EUP/VPU).  On v7x consider q_tile=256.
    """
    T, B, E = hidden_states_tbe.shape
    head_dim = E // num_heads
    assert head_dim * num_heads == E
    if B > 1:
        # Batched inputs index the lane axis per-batch; all Whisper widths (384..1280)
        # are multiples of 128 so this holds in production.
        assert E % 128 == 0, "for B > 1 the embed dim must be a multiple of 128"
    out_dtype = hidden_states_tbe.dtype
    out_itemsize = jnp.dtype(out_dtype).itemsize
    scale = head_dim ** (-0.5)

    # Lane-dense head grouping: heads packed so the minor dim of Q/K/V is G*hd (=128
    # for Whisper's hd=64), giving unmasked stores and dense DMA on the whole QKV path.
    G = _head_group_size(num_heads, head_dim)
    Hg = num_heads // G
    Dg = G * head_dim

    # VMEM budget: ~104 MiB on 128-MiB parts (v5e/v6e), ~52 MiB on v7x.
    if vmem_limit_bytes is None:
        try:
            cap = pltpu.get_tpu_info().vmem_capacity_bytes
        except Exception:
            cap = 64 * 1024 * 1024
        vmem_limit_bytes = int(0.80 * cap)

    # Tile selection + sequence padding (tiles are multiples of 8 and divide T_pad).
    t_aligned = _round_up(T, 8)
    tt = max(8, min(_round_up(t_tile, 8), t_aligned))
    tq = max(8, min(_round_up(q_tile, 8), t_aligned))
    step = (tt * tq) // math.gcd(tt, tq)
    if kv_tile is not None:
        tk = max(8, min(_round_up(kv_tile, 8), t_aligned))
        step = (step * tk) // math.gcd(step, tk)
        T_pad = _round_up(T, step)
    else:
        T_pad = _round_up(T, step)
        budget = int(0.9 * vmem_limit_bytes)
        cands = [T_pad] + [c for c in (512, 256, 128, 64, 32, 16, 8)
                           if c < T_pad and T_pad % c == 0]
        tk = cands[-1]
        for c in cands:   # prefer resident K/V (single KV step) when it fits VMEM
            if _flash_vmem_bytes(tq, c, Hg, Dg, G, head_dim, E, out_itemsize) <= budget:
                tk = c
                break

    # Host-side weight prep (tiny, once per call): fold the softmax scale into the Q
    # columns, pack Q/K/V into one (E, 3E) operand, pre-transpose, cast to bf16.
    wqkv_t = jnp.concatenate([(wq * scale).T, wk.T, wv.T], axis=1).astype(jnp.bfloat16)
    wo_t = wo.T.astype(jnp.bfloat16)                                   # (E, E)
    bo2 = bo.reshape(1, E).astype(jnp.float32)

    # (T, B, E) -> (T, B*E) is a free reshape; bf16 cast halves Kernel A's input DMA.
    x2d = hidden_states_tbe.reshape(T, B * E).astype(jnp.bfloat16)
    if T_pad != T:
        x2d = jnp.pad(x2d, ((0, T_pad - T), (0, 0)))

    # ---- Kernel A: QKV projection, grid (B, T/tt), one matmul per step. ----
    qkv_kernel = functools.partial(_qkv_proj_kernel, groups=Hg, group_dim=Dg)
    qkv_shape = jax.ShapeDtypeStruct((B, Hg, T_pad, Dg), jnp.bfloat16)
    q, k, v = pl.pallas_call(
        qkv_kernel,
        out_shape=(qkv_shape, qkv_shape, qkv_shape),
        grid_spec=pltpu.PrefetchScalarGridSpec(
            num_scalar_prefetch=0,
            grid=(B, T_pad // tt),
            in_specs=[
                pl.BlockSpec((tt, E), lambda b, t: (t, b)),
                # Grid-invariant packed weight: fetched once, single-buffered.
                pl.BlockSpec((E, 3 * E), lambda b, t: (0, 0),
                             pipeline_mode=pl.Buffered(1)),
            ],
            out_specs=[
                pl.BlockSpec((1, Hg, tt, Dg), lambda b, t: (b, 0, t, 0)),
                pl.BlockSpec((1, Hg, tt, Dg), lambda b, t: (b, 0, t, 0)),
                pl.BlockSpec((1, Hg, tt, Dg), lambda b, t: (b, 0, t, 0)),
            ]),
        compiler_params=pltpu.CompilerParams(
            dimension_semantics=("parallel", "parallel"),
            vmem_limit_bytes=vmem_limit_bytes),
    )(x2d, wqkv_t)

    # ---- Kernel B: flash attention + fused output projection.  Output is written
    # time-major (T_pad, B*E) directly, so no wrapper-side transpose is needed.
    # (On v7x, padding T so B * (T_pad//tq) is even keeps both TensorCores busy.)
    flash_kernel = functools.partial(
        _flash_attn_kernel, groups=Hg, group_size=G, head_dim=head_dim,
        group_dim=Dg, seq_len=T, kv_block=tk, masked=(T_pad != T),
        bf16_exp=bf16_exp)
    out2d = pl.pallas_call(
        flash_kernel,
        out_shape=jax.ShapeDtypeStruct((T_pad, B * E), out_dtype),
        grid_spec=pltpu.PrefetchScalarGridSpec(
            num_scalar_prefetch=0,
            grid=(B, T_pad // tq, T_pad // tk),
            in_specs=[
                pl.BlockSpec((1, Hg, tq, Dg), lambda b, qi, ki: (b, 0, qi, 0)),
                pl.BlockSpec((1, Hg, tk, Dg), lambda b, qi, ki: (b, 0, ki, 0)),
                pl.BlockSpec((1, Hg, tk, Dg), lambda b, qi, ki: (b, 0, ki, 0)),
                # Grid-invariant Wo^T / bias: single-buffered to save VMEM.
                pl.BlockSpec((E, E), lambda b, qi, ki: (0, 0),
                             pipeline_mode=pl.Buffered(1)),
                pl.BlockSpec((1, E), lambda b, qi, ki: (0, 0),
                             pipeline_mode=pl.Buffered(1)),
            ],
            out_specs=pl.BlockSpec((tq, E), lambda b, qi, ki: (qi, b)),
            scratch_shapes=[
                pltpu.VMEM((G, Hg, tq, 1), jnp.float32),          # running max
                pltpu.VMEM((G, Hg, tq, 1), jnp.float32),          # running denom
                pltpu.VMEM((G, Hg, tq, head_dim), jnp.float32),   # running P@V acc
                pltpu.VMEM((tq, E), jnp.bfloat16),                # merged-head ctx
            ]),
        compiler_params=pltpu.CompilerParams(
            dimension_semantics=("parallel", "parallel", "arbitrary"),
            vmem_limit_bytes=vmem_limit_bytes),
    )(q, k, v, wo_t, bo2)

    # Drop padded rows; (T, B*E) -> (T, B, E) is a free reshape.
    return out2d[:T].reshape(T, B, E)


# ---------------------------------------------------------------------------
# Pure-JAX fp32 reference of the same forward (for the correctness check).
# ---------------------------------------------------------------------------
def _reference(hidden_states_tbe, wq, wk, wv, wo, bo, *, num_heads):
    T, B, E = hidden_states_tbe.shape
    hd = E // num_heads
    x = jnp.transpose(hidden_states_tbe, (1, 0, 2))          # (B, T, E)
    q = x @ wq.T
    k = x @ wk.T
    v = x @ wv.T

    def split(t):  # (B, T, E) -> (B, H, T, hd)
        return jnp.transpose(t.reshape(B, T, num_heads, hd), (0, 2, 1, 3))

    qh, kh, vh = split(q), split(k), split(v)
    scores = jnp.einsum("bhqd,bhkd->bhqk", qh, kh) / math.sqrt(hd)
    probs = jax.nn.softmax(scores, axis=-1)
    ctx = jnp.einsum("bhqk,bhkd->bhqd", probs, vh)
    ctx = jnp.transpose(ctx, (0, 2, 1, 3)).reshape(B, T, E)
    out = ctx @ wo.T + bo
    return jnp.transpose(out, (1, 0, 2))                     # (T, B, E)


if __name__ == "__main__":
    def make_params(key, E):
        k_q, k_k, k_v, k_o, k_b = jax.random.split(key, 5)
        wq = 0.02 * jax.random.normal(k_q, (E, E), dtype=jnp.float32)
        wk = 0.02 * jax.random.normal(k_k, (E, E), dtype=jnp.float32)
        wv = 0.02 * jax.random.normal(k_v, (E, E), dtype=jnp.float32)
        wo = 0.02 * jax.random.normal(k_o, (E, E), dtype=jnp.float32)
        bo = 0.02 * jax.random.normal(k_b, (E,), dtype=jnp.float32)
        return wq, wk, wv, wo, bo

    def check(out, ref, name):
        max_err = float(jnp.max(jnp.abs(out - ref)))
        # bf16 MXU operands, bf16 exp, approx reciprocal -> loosened tolerance vs fp32.
        assert jnp.allclose(out, ref, atol=1.5e-2, rtol=5e-2), (
            f"{name}: mismatch vs reference (max abs err {max_err})")

    key = jax.random.PRNGKey(0)
    k1, k2, k3, k4 = jax.random.split(key, 4)

    # ---- Test 1: B=2, hd=64 (paired-head lane-dense layout), multi-tile grids. ----
    T, B, E, H = 16, 2, 256, 4
    x1 = jax.random.normal(k1, (T, B, E), dtype=jnp.float32)
    p1 = make_params(k2, E)
    ref1 = _reference(x1, *p1, num_heads=H)

    out1 = jax.block_until_ready(
        whisper_attention(x1, *p1, num_heads=H, t_tile=8, q_tile=8, kv_tile=8))
    assert out1.shape == (T, B, E)
    check(out1, ref1, "tiled")

    # ---- Test 2: auto tile / VMEM configuration (resident-K/V path). ----
    out1b = jax.block_until_ready(whisper_attention(x1, *p1, num_heads=H))
    check(out1b, ref1, "auto-config")

    # ---- Test 3: sequence length needing padding + masked KV columns. ----
    T2, B2, E2, H2 = 20, 1, 128, 4
    x2 = jax.random.normal(k3, (T2, B2, E2), dtype=jnp.float32)
    p2 = make_params(k4, E2)
    ref2 = _reference(x2, *p2, num_heads=H2)

    out2 = jax.block_until_ready(
        whisper_attention(x2, *p2, num_heads=H2, t_tile=8, q_tile=8, kv_tile=8))
    assert out2.shape == (T2, B2, E2)
    check(out2, ref2, "padded+masked")

    print("KERNEL_OK")
</pallas_src>

<mosaic_0001>
module attributes {stable_mosaic.version = 11 : i64} {
  func.func @_qkv_proj_kernel(%arg0: i32, %arg1: i32, %arg2: memref<8x256xbf16, #tpu.memory_space<vmem>>, %arg3: memref<256x768xbf16, #tpu.memory_space<vmem>>, %arg4: memref<1x2x8x128xbf16, #tpu.memory_space<vmem>>, %arg5: memref<1x2x8x128xbf16, #tpu.memory_space<vmem>>, %arg6: memref<1x2x8x128xbf16, #tpu.memory_space<vmem>>) attributes {dimension_semantics = [#tpu.dimension_semantics<parallel>, #tpu.dimension_semantics<parallel>], iteration_bounds = array<i64: 2, 2>, scalar_prefetch = 0 : i64, scratch_operands = 0 : i64, tpu.core_type = #tpu.core_type<tc>, window_params = [{transform_indices = @transform_0, window_bounds = array<i64: 8, 256>}, {pipeline_mode = #tpu.pipeline_mode<synchronous>, transform_indices = @transform_1, window_bounds = array<i64: 256, 768>}, {transform_indices = @transform_2, window_bounds = array<i64: 1, 2, 8, 128>}, {transform_indices = @transform_3, window_bounds = array<i64: 1, 2, 8, 128>}, {transform_indices = @transform_4, window_bounds = array<i64: 1, 2, 8, 128>}]} {
    %c0 = arith.constant 0 : index
    %c0_0 = arith.constant 0 : index
    %0 = vector.load %arg2[%c0, %c0_0] : memref<8x256xbf16, #tpu.memory_space<vmem>>, vector<8x256xbf16>
    %c0_1 = arith.constant 0 : index
    %c0_2 = arith.constant 0 : index
    %1 = vector.load %arg3[%c0_1, %c0_2] : memref<256x768xbf16, #tpu.memory_space<vmem>>, vector<256x768xbf16>
    %cst = arith.constant dense<0.000000e+00> : vector<8x768xf32>
    %2 = tpu.matmul %0, %1, %cst {dimension_numbers = #tpu.dot_dimension_numbers<[1], [0], [0], [1], [0, 0, 1, 1], [], []>} : vector<8x256xbf16>, vector<256x768xbf16>, vector<8x768xf32> -> vector<8x768xf32>
    %3 = vector.extract_strided_slice %2 {offsets = [0, 0], sizes = [8, 128], strides = [1, 1]} : vector<8x768xf32> to vector<8x128xf32>
    %4 = arith.truncf %3 : vector<8x128xf32> to vector<8x128xbf16>
    %c0_3 = arith.constant 0 : index
    %c0_4 = arith.constant 0 : index
    %c0_5 = arith.constant 0 : index
    %c0_6 = arith.constant 0 : index
    %5 = vector.load %arg4[%c0_3, %c0_4, %c0_5, %c0_6] : memref<1x2x8x128xbf16, #tpu.memory_space<vmem>>, vector<1x1x8x128xbf16>
    %6 = vector.shape_cast %5 : vector<1x1x8x128xbf16> to vector<8x128xbf16>
    %7 = vector.shape_cast %4 : vector<8x128xbf16> to vector<1x1x8x128xbf16>
    tpu.vector_store %arg4[%c0_3, %c0_4, %c0_5, %c0_6], %7 {strides = array<i32>} : memref<1x2x8x128xbf16, #tpu.memory_space<vmem>>, vector<1x1x8x128xbf16>,
    %8 = vector.extract_strided_slice %2 {offsets = [0, 256], sizes = [8, 128], strides = [1, 1]} : vector<8x768xf32> to vector<8x128xf32>
    %9 = arith.truncf %8 : vector<8x128xf32> to vector<8x128xbf16>
    %c0_7 = arith.constant 0 : index
    %c0_8 = arith.constant 0 : index
    %c0_9 = arith.constant 0 : index
    %c0_10 = arith.constant 0 : index
    %10 = vector.load %arg5[%c0_7, %c0_8, %c0_9, %c0_10] : memref<1x2x8x128xbf16, #tpu.memory_space<vmem>>, vector<1x1x8x128xbf16>
    %11 = vector.shape_cast %10 : vector<1x1x8x128xbf16> to vector<8x128xbf16>
    %12 = vector.shape_cast %9 : vector<8x128xbf16> to vector<1x1x8x128xbf16>
    tpu.vector_store %arg5[%c0_7, %c0_8, %c0_9, %c0_10], %12 {strides = array<i32>} : memref<1x2x8x128xbf16, #tpu.memory_space<vmem>>, vector<1x1x8x128xbf16>,
    %13 = vector.extract_strided_slice %2 {offsets = [0, 512], sizes = [8, 128], strides = [1, 1]} : vector<8x768xf32> to vector<8x128xf32>
    %14 = arith.truncf %13 : vector<8x128xf32> to vector<8x128xbf16>
    %c0_11 = arith.constant 0 : index
    %c0_12 = arith.constant 0 : index
    %c0_13 = arith.constant 0 : index
    %c0_14 = arith.constant 0 : index
    %15 = vector.load %arg6[%c0_11, %c0_12, %c0_13, %c0_14] : memref<1x2x8x128xbf16, #tpu.memory_space<vmem>>, vector<1x1x8x128xbf16>
    %16 = vector.shape_cast %15 : vector<1x1x8x128xbf16> to vector<8x128xbf16>
    %17 = vector.shape_cast %14 : vector<8x128xbf16> to vector<1x1x8x128xbf16>
    tpu.vector_store %arg6[%c0_11, %c0_12, %c0_13, %c0_14], %17 {strides = array<i32>} : memref<1x2x8x128xbf16, #tpu.memory_space<vmem>>, vector<1x1x8x128xbf16>,
    %18 = vector.extract_strided_slice %2 {offsets = [0, 128], sizes = [8, 128], strides = [1, 1]} : vector<8x768xf32> to vector<8x128xf32>
    %19 = arith.truncf %18 : vector<8x128xf32> to vector<8x128xbf16>
    %c0_15 = arith.constant 0 : index
    %c1 = arith.constant 1 : index
    %c0_16 = arith.constant 0 : index
    %c0_17 = arith.constant 0 : index
    %20 = vector.load %arg4[%c0_15, %c1, %c0_16, %c0_17] : memref<1x2x8x128xbf16, #tpu.memory_space<vmem>>, vector<1x1x8x128xbf16>
    %21 = vector.shape_cast %20 : vector<1x1x8x128xbf16> to vector<8x128xbf16>
    %22 = vector.shape_cast %19 : vector<8x128xbf16> to vector<1x1x8x128xbf16>
    tpu.vector_store %arg4[%c0_15, %c1, %c0_16, %c0_17], %22 {strides = array<i32>} : memref<1x2x8x128xbf16, #tpu.memory_space<vmem>>, vector<1x1x8x128xbf16>,
    %23 = vector.extract_strided_slice %2 {offsets = [0, 384], sizes = [8, 128], strides = [1, 1]} : vector<8x768xf32> to vector<8x128xf32>
    %24 = arith.truncf %23 : vector<8x128xf32> to vector<8x128xbf16>
    %c0_18 = arith.constant 0 : index
    %c1_19 = arith.constant 1 : index
    %c0_20 = arith.constant 0 : index
    %c0_21 = arith.constant 0 : index
    %25 = vector.load %arg5[%c0_18, %c1_19, %c0_20, %c0_21] : memref<1x2x8x128xbf16, #tpu.memory_space<vmem>>, vector<1x1x8x128xbf16>
    %26 = vector.shape_cast %25 : vector<1x1x8x128xbf16> to vector<8x128xbf16>
    %27 = vector.shape_cast %24 : vector<8x128xbf16> to vector<1x1x8x128xbf16>
    tpu.vector_store %arg5[%c0_18, %c1_19, %c0_20, %c0_21], %27 {strides = array<i32>} : memref<1x2x8x128xbf16, #tpu.memory_space<vmem>>, vector<1x1x8x128xbf16>,
    %28 = vector.extract_strided_slice %2 {offsets = [0, 640], sizes = [8, 128], strides = [1, 1]} : vector<8x768xf32> to vector<8x128xf32>
    %29 = arith.truncf %28 : vector<8x128xf32> to vector<8x128xbf16>
    %c0_22 = arith.constant 0 : index
    %c1_23 = arith.constant 1 : index
    %c0_24 = arith.constant 0 : index
    %c0_25 = arith.constant 0 : index
    %30 = vector.load %arg6[%c0_22, %c1_23, %c0_24, %c0_25] : memref<1x2x8x128xbf16, #tpu.memory_space<vmem>>, vector<1x1x8x128xbf16>
    %31 = vector.shape_cast %30 : vector<1x1x8x128xbf16> to vector<8x128xbf16>
    %32 = vector.shape_cast %29 : vector<8x128xbf16> to vector<1x1x8x128xbf16>
    tpu.vector_store %arg6[%c0_22, %c1_23, %c0_24, %c0_25], %32 {strides = array<i32>} : memref<1x2x8x128xbf16, #tpu.memory_space<vmem>>, vector<1x1x8x128xbf16>,
    return
  }
  func.func @transform_0(%arg0: i32, %arg1: i32) -> (i32, i32) {
    %c0_i32 = arith.constant 0 : i32
    return %arg1, %arg0 : i32, i32
  }
  func.func @transform_1(%arg0: i32, %arg1: i32) -> (i32, i32) {
    %c0_i32 = arith.constant 0 : i32
    %c0_i32_0 = arith.constant 0 : i32
    %c0_i32_1 = arith.constant 0 : i32
    return %c0_i32, %c0_i32_0 : i32, i32
  }
  func.func @transform_2(%arg0: i32, %arg1: i32) -> (i32, i32, i32, i32) {
    %c0_i32 = arith.constant 0 : i32
    %c0_i32_0 = arith.constant 0 : i32
    %c0_i32_1 = arith.constant 0 : i32
    return %arg0, %c0_i32, %arg1, %c0_i32_0 : i32, i32, i32, i32
  }
  func.func @transform_3(%arg0: i32, %arg1: i32) -> (i32, i32, i32, i32) {
    %c0_i32 = arith.constant 0 : i32
    %c0_i32_0 = arith.constant 0 : i32
    %c0_i32_1 = arith.constant 0 : i32
    return %arg0, %c0_i32, %arg1, %c0_i32_0 : i32, i32, i32, i32
  }
  func.func @transform_4(%arg0: i32, %arg1: i32) -> (i32, i32, i32, i32) {
    %c0_i32 = arith.constant 0 : i32
    %c0_i32_0 = arith.constant 0 : i32
    %c0_i32_1 = arith.constant 0 : i32
    return %arg0, %c0_i32, %arg1, %c0_i32_0 : i32, i32, i32, i32
  }
}

</mosaic_0001>

<bundles_post_ra>
// kernel: tpu_custom_call.1
= control target key start
LH: loop header
LB: loop body
LE: loop exit
PB: predicated region body
PF: predicated region fallthrough
CT: control target
= control target key end

     0   :  { %s2188_s0 = inlined_call_operand.hbm [shape: bf16[16,512], index: 0, kind: input, shape index: {}]   ;;  %s2189_s1 = inlined_call_operand.hbm [shape: bf16[256,768], index: 1, kind: input, shape index: {}]   ;;  %s2190_s2 = inlined_call_operand.hbm [shape: bf16[2,2,16,128], index: 2, kind: output, shape index: {0}]   ;;  %s2191_s3 = inlined_call_operand.hbm [shape: bf16[2,2,16,128], index: 3, kind: output, shape index: {1}]   ;;  %s2192_s4 = inlined_call_operand.hbm [shape: bf16[2,2,16,128], index: 4, kind: output, shape index: {2}]  }
   0x1   :  { %2202 = sst [smem:[#allocation19_spill]] %s2189_s1 }
   0x2   :  { %2203 = sst [smem:[#allocation20_spill]] %s2192_s4 }
   0x3   :  { %10 = vsyncpa [#allocation3], 0 }
   0x4   :  { %12 = vsyncpa [#allocation3 + $0x1], 0 }
   0x5   :  { %13 = vsyncpa [#allocation6], 0 }
   0x6   :  { %14 = vsyncpa [#allocation4], 0 }
   0x7   :  { %16 = vsyncpa [#allocation4 + $0x1], 0 }
   0x8   :  { %17 = vsyncpa [#allocation9], 0 }
   0x9   :  { %19 = vsyncpa [#allocation9 + $0x1], 0  ;;  %s1849_s15 = smov 0   ;;  %s1851_s16 = smov 0  }
   0xa   :  { %s1853_s17 = smov 0   ;;  %s1855_s18 = smov 0  }
   0xb   :  { %s1857_s19 = smov 0   ;;  %s1859_s20 = smov 0  }
   0xc   :  { %s1861_s21 = smov 0   ;;  %s1863_s22 = smov 0  }
   0xd LB: > { %2204 = sst [smem:[#allocation15_spill]] %s1784_s15  ;;  %s1890_s23 = sadd.s32 4294967295, %s1812_s22   ;;  %s1812_s22 = sphi %s1863_s22, %s25_s22   ;;  %s1808_s21 = sphi %s1861_s21, %s2234_s21   ;;  %s1804_s20 = sphi %s1859_s20, %s2233_s20   ;;  %s1800_s19 = sphi %s1857_s19, %s2232_s19   ;;  %s1796_s18 = sphi %s1855_s18, %s2231_s18   ;;  %s1792_s17 = sphi %s1853_s17, %s2230_s17   ;;  %s1788_s16 = sphi %s1851_s16, %s2229_s16   ;;  %s1784_s15 = sphi %s1849_s15, %s2228_s15  }
   0xe   : > { %s2196_s24 = sadd.s32 4294967294, %s1812_s22   ;;  %p59_p0 = scmp.ne.s32.totalorder %s1788_s16, %s1784_s15 }
   0xf   : > { %p2193_p1 = scmp.eq.s32.totalorder %s1890_s23, 0  ;;  %p112_p3 = scmp.eq.s32.totalorder %s2196_s24, 3 }
  0x10   : > { %p1217_p5 = scmp.ge.s32.totalorder %s1812_s22, 1  ;;  %p175_p7 = scmp.lt.s32.totalorder %s1812_s22, 5 }
  0x11   : > { %p1901_p4 = por %p2193_p1, %p59_p0  ;;  %p1906_p6 = por %p112_p3, %p59_p0 }
  0x12   : > { %p1911_p8 = pnand %p1217_p5, %p175_p7  ;;  %s1814_s28 = smov [#allocation5]  }
  0x13   : > { %s2205_s25 = scalar_select %p1901_p4, 1, 0 }
  0x14   : > { %s2206_s26 = scalar_select %p1906_p6, 1, 0 }
  0x15   : > { %s2208_s27 = scalar_select %p1911_p8, 1, 0 }
  0x16   : > { %2207 = sst [smem:[#allocation16_spill]] %s2206_s26  ;;  %s187_s29 = sshll.u32 %s1814_s28, 4  ;;  %s188_s29 = int_to_ptr.vmem [resolvable:$true] %s187_s29 }
  0x17   : > { %p1354_p9 = pneg %p1911_p8  ;;  %s2210_s1 = sld [smem:[#allocation19_spill]] }
  0x19   : > { %p1919_p10 = pnand %p1354_p9, %p2193_p1 }
  0x1b   : > { %p1594_p12 = pneg %p1919_p10 }
  0x1d   : > { %s1592_s7 = scalar_lea.hbm %s2210_s1, 12288 }
  0x1e   : > { %p1593_p11 = scmp.ne.s32.totalorder %s2210_s1, %s1592_s7  ;;  %p1599_p3 = scmp.lt.u32.totalorder %s1592_s7, %s2210_s1 }
  0x20   : > { %p1595_p13 = pnand %p1594_p12, %p1593_p11 }
  0x22   : > { %p1596_p0 = pneg %p1595_p13 }
  0x24   : > { %p1601_p5 = pnand %p1599_p3, %p1596_p0 }
  0x26   : > { %1604 = shalt.err (!%p1601_p5)
}
  0x27   : > { %s1605_s12 = scalar_lea.vmem %s188_s29, 12288  ;;  %p1613_p2 = scmp.lt.s32.totalorder %s188_s29, %s188_s29 }
  0x28   : > { %p1606_p7 = scmp.ne.s32.totalorder %s188_s29, %s1605_s12  ;;  %p1614_p6 = scmp.lt.s32.totalorder %s1605_s12, %s1605_s12 }
  0x2a   : > { %p1608_p9 = pnand %p1606_p7, %p1594_p12  ;;  %p1615_p4 = por %p1614_p6, %p1613_p2 }
  0x2c   : > { %p1609_p1 = pneg %p1608_p9 }
  0x2e   : > { %p1616_p8 = pnand %p1615_p4, %p1609_p1 }
  0x30   : > { %1619 = shalt.err (!%p1616_p8)
}
  0x31   : > { %s1815_s13 = smov 384   ;;  %s1816_s14 = smov 24  }
  0x32   : > { %1357 = dma.hbm_to_vmem [thread:$0]  (!%p1919_p10), %s2210_s1, 12288, %s188_s29, [#allocation6], %s1815_s13, %s1815_s13, %s1816_s14  }
  0x33   : > { %s34_s6 = sadd.s32 1, %s1804_s20  ;;  %s37_s7 = sadd.s32 1, %s1808_s21 }
  0x34   : > { %p35_p1 = scmp.ge.s32.totalorder %s34_s6, 2  ;;  %s46_s8 = sadd.s32 1, %s1792_s17 }
  0x35   : > { %p53_p2 = scmp.ne.s32.totalorder %s1792_s17, %s1788_s16  ;;  %p54_p4 = scmp.eq.s32.totalorder %s1812_s22, 0 }
  0x36   : > { %s2236_s6 = smov (%p35_p1, %s34_s6), 0  ;;  %s2238_s7 = smov (!%p35_p1, %s37_s7), %s1808_s21 }
  0x37   : > { %2211 = sst [smem:[#allocation17_spill]] %s2236_s6  ;;  %s41_s9 = ssub.s32 %s1804_s20, %s2236_s6 }
  0x38   : > { %p39_p6 = scmp.ge.s32.totalorder %s2238_s7, 2  ;;  %p2212_p8 = scmp.eq.s32.totalorder %s1890_s23, 3 }
  0x39   : > { %p1956_p10 = por %p54_p4, %p53_p2  ;;  %p1373_p12 = scmp.lt.s32.totalorder %s1812_s22, 4 }
  0x3a   : > { %p1952_p11 = por %p2212_p8, %p53_p2  ;;  %s2240_s7 = smov (%p39_p6, %s2238_s7), 0 }
  0x3b   : > { %2215 = sst [smem:[#allocation18_spill]] %s2240_s7  ;;  %s201_s10 = sand.u32 1, %s1792_s17  }
  0x3c   : > { %s1221_s11 = sshll.u32 %s1808_s21, 1  ;;  %s42_s12 = ssub.s32 %s1808_s21, %s2240_s7 }
  0x3d   : > { %s43_s13 = sor.u32 %s42_s12, %s41_s9  ;;  %s1220_s14 = sshll.u32 %s201_s10, 3 }
  0x3e   : > { %p44_p13 = scmp.eq.s32.totalorder %s43_s13, 0  ;;  %s1222_s28 = sshll.u32 %s1804_s20, 2 }
  0x3f   : > { %s205_s5 = scalar_lea.vmem [#allocation2], %s1220_s14  ;;  %s211_s6 = sadd.s32 %s1222_s28, %s1221_s11 }
  0x40   : > { %s215_s24 = sshll.u32 %s205_s5, 4  ;;  %s1223_s26 = sshll.u32 %s211_s6, 6  ;;  %s1971_s24 = int_to_ptr.vmem [resolvable:$true] %s215_s24 }
  0x41   : > { %s1969_s1 = scalar_select %p44_p13, %s1792_s17, %s46_s8  }
  0x42   : > { %p1977_p0 = pnand %p1373_p12, %p1956_p10  ;;  %s1984_s9 = scalar_lea.hbm %s2188_s0, %s1223_s26 }
  0x43   : > { %s202_s8 = scalar_lea.sflag [#allocation3], %s201_s10  ;;  %s1620_s11 = scalar_lea.hbm %s1984_s9, 128 }
  0x44   : > { %p1621_p3 = scmp.ne.s32.totalorder %s1984_s9, %s1620_s11  ;;  %p1622_p5 = pneg %p1977_p0 }
  0x45   : > { %s1625_s4 = scalar_lea.hbm %s2188_s0, 512  ;;  %p1626_p1 = scmp.lt.u32.totalorder %s1984_s9, %s2188_s0 }
  0x46   : > { %p1623_p7 = pnand %p1622_p5, %p1621_p3  ;;  %p1627_p2 = scmp.lt.u32.totalorder %s1625_s4, %s1620_s11 }
  0x47   : > { %p1629_p6 = scmp.lt.u32.totalorder %s1620_s11, %s1984_s9 }
  0x48   : > { %p1624_p9 = pneg %p1623_p7  ;;  %p1628_p4 = por %p1627_p2, %p1626_p1 }
  0x4a   : > { %p1630_p8 = por %p1629_p6, %p1628_p4 }
  0x4c   : > { %p1631_p10 = pnand %p1630_p8, %p1624_p9 }
  0x4e   : > { %1634 = shalt.err (!%p1631_p10)
}
  0x4f   : > { %s1635_s10 = scalar_lea.vmem %s1971_s24, 128  ;;  %s1817_s12 = smov [#allocation2]  }
  0x50   : > { %p1636_p12 = scmp.ne.s32.totalorder %s1971_s24, %s1635_s10  ;;  %s1640_s13 = sshll.u32 %s1817_s12, 4  ;;  %s1641_s13 = int_to_ptr.vmem [resolvable:$false] %s1640_s13 }
  0x51   : > { %s1642_s14 = scalar_lea.vmem %s1641_s13, 256  ;;  %p1643_p7 = scmp.lt.s32.totalorder %s1971_s24, %s1641_s13 }
  0x52   : > { %p1638_p13 = pnand %p1636_p12, %p1622_p5  ;;  %p1644_p1 = scmp.lt.s32.totalorder %s1642_s14, %s1635_s10 }
  0x54   : > { %p1639_p3 = pneg %p1638_p13  ;;  %p1645_p2 = por %p1644_p1, %p1643_p7 }
  0x56   : > { %p1646_p4 = pnand %p1645_p2, %p1639_p3 }
  0x58   : > { %1649 = shalt.err (!%p1646_p4)
}
  0x59   : > { %1361 = dma.hbm_to_vmem [thread:$0]  (!%p1977_p0), %s1984_s9, 128, %s1971_s24, %s202_s8  }
  0x5a   : > { %p2217_p9 = scmp.ne.s32.totalorder %s2208_s27, 0 }
  0x5b   : > { %s2014_s28 = sand.u32 (!%p2217_p9), 1, %s1788_s16   ;;  %p2218_p5 = scmp.ne.s32.totalorder (!%p2217_p9), %s2205_s25, 0 }
  0x5c   : > { %224 = sbr.rel (%p2217_p9) target bundleno = 461 (0x1cd), region = 28  ;;  %s2017_s5 = sshll.u32 (!%p2217_p9), %s2014_s28, 3 }
  0x5d   : > { %s227_s11 = scalar_lea.sflag (!%p2217_p9), [#allocation3], %s2014_s28  ;;  %s230_s6 = scalar_lea.vmem (!%p2217_p9), [#allocation2], %s2017_s5 }
  0x63   : > { %1767 = dma.done.wait (%p2218_p5), %s227_s11, 128  }
  0x64   : > { %1769 = vsyncadd (%p2218_p5), %s227_s11, 4294967168  ;;  %p2219_p0 = scmp.eq.s32.totalorder %s1890_s23, 0 }
  0x66   : > { %1771 = dma.done.wait (%p2219_p0), [#allocation6], 12288   ;;  %p2220_p6 = pmov %p2219_p0 }
  0x67   : > { %v1446_v0 = vld [vmem:[#allocation5 + $0x4] ss:$24 sps:$4 sm:$0xff]   ;;  %v1448_v1 = vld [vmem:[#allocation5] ss:$24 sps:$4 sm:$0xff]   ;;  %v1449_v2 = vld [vmem:[#allocation5 + $0x34] ss:$24 sps:$4 sm:$0xff]  }
  0x68   : > { %1773 = vsyncadd (%p2220_p6), [#allocation6], 4294955008  ;;  %854 = vmatprep.subr.bf16.mxu0 %v1446_v0  ;;  %v1451_v3 = vld [vmem:[#allocation5 + $0x30] ss:$24 sps:$4 sm:$0xff]   ;;  %v1452_v4 = vld [vmem:[#allocation5 + $0x64] ss:$24 sps:$4 sm:$0xff]  }
  0x69   : > { %855 = vmatpush1.bf16.msra.mxu0 %v1448_v1  ;;  %v1454_v5 = vld [vmem:[#allocation5 + $0x60] ss:$24 sps:$4 sm:$0xff]   ;;  %v1455_v6 = vld [vmem:[#allocation5 + $0x94] ss:$24 sps:$4 sm:$0xff]   ;;  %v1457_v7 = vld [vmem:[#allocation5 + $0x90] ss:$24 sps:$4 sm:$0xff]  }
  0x6a   : > { %856 = vmatprep.subr.bf16.mxu0 %v1449_v2  ;;  %v1458_v8 = vld [vmem:[#allocation5 + $0xc4] ss:$24 sps:$4 sm:$0xff]   ;;  %v1460_v9 = vld [vmem:[#allocation5 + $0xc0] ss:$24 sps:$4 sm:$0xff]   ;;  %v1461_v10 = vld [vmem:[#allocation5 + $0xf4] ss:$24 sps:$4 sm:$0xff]  }
  0x6b   : > { %v1463_v11 = vld [vmem:[#allocation5 + $0xf0] ss:$24 sps:$4 sm:$0xff]   ;;  %v1464_v12 = vld [vmem:[#allocation5 + $0x124] ss:$24 sps:$4 sm:$0xff]   ;;  %v1466_v14 = vld [vmem:[#allocation5 + $0x120] ss:$24 sps:$4 sm:$0xff]  }
  0x6c   : > { %v1493_v13 = vld [vmem:[#allocation5 + $0xc] ss:$24 sps:$4 sm:$0xff]   ;;  %v1496_v15 = vld [vmem:[#allocation5 + $0x8] ss:$24 sps:$4 sm:$0xff]   ;;  %v2031_v16 = vld [vmem:[%s230_s6] sm:$0xff]  ;;  %s1334_s15 = sshll.u32 %s1800_s19, 2 }
  0x6d   : > { %857 = vmatpush1.bf16.msra.mxu0 %v1451_v3  ;;  %895 = vmatprep.subr.bf16.mxu1 %v1493_v13  ;;  %v2035_v17 = vcombine.high %v2031_v16, %v2031_v16  ;;  %v1499_v18 = vld [vmem:[#allocation5 + $0x3c] ss:$24 sps:$4 sm:$0xff]   ;;  %v1504_v20 = vld [vmem:[#allocation5 + $0x38] ss:$24 sps:$4 sm:$0xff]   ;;  %v1505_v21 = vld [vmem:[#allocation5 + $0x6c] ss:$24 sps:$4 sm:$0xff]   ;;  %v2041_v58 = vcombine.low %v2031_v16, %v2031_v16  ;;  %s1014_s24 = sadd.s32 %s1796_s18, %s1334_s15 }
  0x6e   : > { %858 = vmatprep.subr.bf16.mxu0 %v1452_v4  ;;  %v1467_v19 = vld [vmem:[#allocation5 + $0x154] ss:$24 sps:$4 sm:$0xff]   ;;  %896 = vmatpush1.bf16.msra.mxu1 %v1496_v15  ;;  %v1469_v22 = vld [vmem:[#allocation5 + $0x150] ss:$24 sps:$4 sm:$0xff]   ;;  %v1470_v23 = vld [vmem:[#allocation5 + $0x184] ss:$24 sps:$4 sm:$0xff]  }
  0x6f   : > { %886 = vmatprep.mubr.bf16.mxu0 %v2035_v17  ;;  %897 = vmatprep.subr.bf16.mxu1 %v1499_v18  ;;  %v1510_v24 = vld [vmem:[#allocation5 + $0x68] ss:$24 sps:$4 sm:$0xff]   ;;  %v1511_v25 = vld [vmem:[#allocation5 + $0x9c] ss:$24 sps:$4 sm:$0xff]   ;;  %v1516_v28 = vld [vmem:[#allocation5 + $0x98] ss:$24 sps:$4 sm:$0xff]  }
  0x70   : > { %927 = vmatprep.mubr.bf16.mxu1 %v2035_v17  ;;  %v1472_v26 = vld [vmem:[#allocation5 + $0x180] ss:$24 sps:$4 sm:$0xff]   ;;  %v1473_v27 = vld [vmem:[#allocation5 + $0x1b4] ss:$24 sps:$4 sm:$0xff]   ;;  %v1475_v30 = vld [vmem:[#allocation5 + $0x1b0] ss:$24 sps:$4 sm:$0xff]  }
  0x71   : > { %859 = vmatpush1.bf16.msra.mxu0 %v1454_v5  ;;  %v1517_v29 = vld [vmem:[#allocation5 + $0xcc] ss:$24 sps:$4 sm:$0xff]   ;;  %v1522_v32 = vld [vmem:[#allocation5 + $0xc8] ss:$24 sps:$4 sm:$0xff]   ;;  %v1523_v33 = vld [vmem:[#allocation5 + $0xfc] ss:$24 sps:$4 sm:$0xff]  }
  0x72   : > { %860 = vmatprep.subr.bf16.mxu0 %v1455_v6  ;;  %898 = vmatpush1.bf16.msra.mxu1 %v1504_v20  ;;  %v1476_v31 = vld [vmem:[#allocation5 + $0x1e4] ss:$24 sps:$4 sm:$0xff]   ;;  %v1478_v34 = vld [vmem:[#allocation5 + $0x1e0] ss:$24 sps:$4 sm:$0xff]   ;;  %v1479_v35 = vld [vmem:[#allocation5 + $0x214] ss:$24 sps:$4 sm:$0xff]  }
  0x73   : > { %899 = vmatprep.subr.bf16.mxu1 %v1505_v21  ;;  %v1528_v36 = vld [vmem:[#allocation5 + $0xf8] ss:$24 sps:$4 sm:$0xff]   ;;  %v1529_v37 = vld [vmem:[#allocation5 + $0x12c] ss:$24 sps:$4 sm:$0xff]   ;;  %v1534_v40 = vld [vmem:[#allocation5 + $0x128] ss:$24 sps:$4 sm:$0xff]  }
  0x74   : > { %v1481_v38 = vld [vmem:[#allocation5 + $0x210] ss:$24 sps:$4 sm:$0xff]   ;;  %v1482_v39 = vld [vmem:[#allocation5 + $0x244] ss:$24 sps:$4 sm:$0xff]   ;;  %v1484_v42 = vld [vmem:[#allocation5 + $0x240] ss:$24 sps:$4 sm:$0xff]  }
  0x75   : > { %861 = vmatpush1.bf16.msra.mxu0 %v1457_v7  ;;  %v1535_v41 = vld [vmem:[#allocation5 + $0x15c] ss:$24 sps:$4 sm:$0xff]   ;;  %v1540_v44 = vld [vmem:[#allocation5 + $0x158] ss:$24 sps:$4 sm:$0xff]   ;;  %v1541_v45 = vld [vmem:[#allocation5 + $0x18c] ss:$24 sps:$4 sm:$0xff]  }
  0x76   : > { %862 = vmatprep.subr.bf16.mxu0 %v1458_v8  ;;  %900 = vmatpush1.bf16.msra.mxu1 %v1510_v24  ;;  %v1485_v43 = vld [vmem:[#allocation5 + $0x274] ss:$24 sps:$4 sm:$0xff]   ;;  %v1487_v46 = vld [vmem:[#allocation5 + $0x270] ss:$24 sps:$4 sm:$0xff]   ;;  %v1488_v47 = vld [vmem:[#allocation5 + $0x2a4] ss:$24 sps:$4 sm:$0xff]  }
  0x77   : > { %901 = vmatprep.subr.bf16.mxu1 %v1511_v25  ;;  %v1546_v48 = vld [vmem:[#allocation5 + $0x188] ss:$24 sps:$4 sm:$0xff]   ;;  %v1547_v49 = vld [vmem:[#allocation5 + $0x1bc] ss:$24 sps:$4 sm:$0xff]   ;;  %v1552_v52 = vld [vmem:[#allocation5 + $0x1b8] ss:$24 sps:$4 sm:$0xff]  }
  0x78   : > { %v1490_v50 = vld [vmem:[#allocation5 + $0x2a0] ss:$24 sps:$4 sm:$0xff]   ;;  %v1491_v51 = vld [vmem:[#allocation5 + $0x2d4] ss:$24 sps:$4 sm:$0xff]   ;;  %v1495_v54 = vld [vmem:[#allocation5 + $0x2d0] ss:$24 sps:$4 sm:$0xff]  }
  0x79   : > { %863 = vmatpush1.bf16.msra.mxu0 %v1460_v9  ;;  %v1553_v53 = vld [vmem:[#allocation5 + $0x1ec] ss:$24 sps:$4 sm:$0xff]   ;;  %v1558_v56 = vld [vmem:[#allocation5 + $0x1e8] ss:$24 sps:$4 sm:$0xff]   ;;  %v1559_v57 = vld [vmem:[#allocation5 + $0x21c] ss:$24 sps:$4 sm:$0xff]  }
  0x7a   : > { %864 = vmatprep.subr.bf16.mxu0 %v1461_v10  ;;  %902 = vmatpush1.bf16.msra.mxu1 %v1516_v28  ;;  %v1503_v55 = vld [vmem:[#allocation5 + $0x14] ss:$24 sps:$4 sm:$0xff]   ;;  %v1501_v59 = vld [vmem:[#allocation5 + $0x10] ss:$24 sps:$4 sm:$0xff]   ;;  %v1509_v60 = vld [vmem:[#allocation5 + $0x44] ss:$24 sps:$4 sm:$0xff]  }
  0x7b   : > { %903 = vmatprep.subr.bf16.mxu1 %v1517_v29  ;;  %v1564_v61 = vld [vmem:[#allocation5 + $0x218] ss:$24 sps:$4 sm:$0xff]   ;;  %v1565_v62 = vld [vmem:[#allocation5 + $0x24c] ss:$24 sps:$4 sm:$0xff]   ;;  %v1570_v1 = vld [vmem:[#allocation5 + $0x248] ss:$24 sps:$4 sm:$0xff]  }
  0x7c   : > { %v1507_v63 = vld [vmem:[#allocation5 + $0x40] ss:$24 sps:$4 sm:$0xff]   ;;  %v1515_v0 = vld [vmem:[#allocation5 + $0x74] ss:$24 sps:$4 sm:$0xff]   ;;  %v1513_v3 = vld [vmem:[#allocation5 + $0x70] ss:$24 sps:$4 sm:$0xff]  }
  0x7d   : > { %865 = vmatpush1.bf16.msra.mxu0 %v1463_v11  ;;  %v1571_v2 = vld [vmem:[#allocation5 + $0x27c] ss:$24 sps:$4 sm:$0xff]   ;;  %v1576_v5 = vld [vmem:[#allocation5 + $0x278] ss:$24 sps:$4 sm:$0xff]   ;;  %v1577_v6 = vld [vmem:[#allocation5 + $0x2ac] ss:$24 sps:$4 sm:$0xff]  }
  0x7e   : > { %866 = vmatprep.subr.bf16.mxu0 %v1464_v12  ;;  %904 = vmatpush1.bf16.msra.mxu1 %v1522_v32  ;;  %v1521_v4 = vld [vmem:[#allocation5 + $0xa4] ss:$24 sps:$4 sm:$0xff]   ;;  %v1519_v7 = vld [vmem:[#allocation5 + $0xa0] ss:$24 sps:$4 sm:$0xff]   ;;  %v1527_v8 = vld [vmem:[#allocation5 + $0xd4] ss:$24 sps:$4 sm:$0xff]  }
  0x7f   : > { %905 = vmatprep.subr.bf16.mxu1 %v1523_v33  ;;  %v1582_v9 = vld [vmem:[#allocation5 + $0x2a8] ss:$24 sps:$4 sm:$0xff]   ;;  %v1583_v10 = vld [vmem:[#allocation5 + $0x2dc] ss:$24 sps:$4 sm:$0xff]   ;;  %v1588_v13 = vld [vmem:[#allocation5 + $0x2d8] ss:$24 sps:$4 sm:$0xff]  }
  0x80   : > { %v1525_v11 = vld [vmem:[#allocation5 + $0xd0] ss:$24 sps:$4 sm:$0xff]   ;;  %v1533_v12 = vld [vmem:[#allocation5 + $0x104] ss:$24 sps:$4 sm:$0xff]   ;;  %v1539_v15 = vld [vmem:[#allocation5 + $0x134] ss:$24 sps:$4 sm:$0xff]  }
  0x81   : > { %867 = vmatpush1.bf16.msra.mxu0 %v1466_v14  ;;  %v1531_v14 = vld [vmem:[#allocation5 + $0x100] ss:$24 sps:$4 sm:$0xff]   ;;  %v1537_v16 = vld [vmem:[#allocation5 + $0x130] ss:$24 sps:$4 sm:$0xff]   ;;  %v1557_v21 = vld [vmem:[#allocation5 + $0x1c4] ss:$24 sps:$4 sm:$0xff]  }
  0x82   : > { %868 = vmatprep.subr.bf16.mxu0 %v1467_v19  ;;  %906 = vmatpush1.bf16.msra.mxu1 %v1528_v36  ;;  %v1543_v18 = vld [vmem:[#allocation5 + $0x160] ss:$24 sps:$4 sm:$0xff]   ;;  %v1551_v19 = vld [vmem:[#allocation5 + $0x194] ss:$24 sps:$4 sm:$0xff]   ;;  %v1549_v20 = vld [vmem:[#allocation5 + $0x190] ss:$24 sps:$4 sm:$0xff]  }
  0x83   : > { %907 = vmatprep.subr.bf16.mxu1 %v1529_v37  ;;  %v1561_v24 = vld [vmem:[#allocation5 + $0x1f0] ss:$24 sps:$4 sm:$0xff]   ;;  %v1569_v25 = vld [vmem:[#allocation5 + $0x224] ss:$24 sps:$4 sm:$0xff]   ;;  %s254_s25 = scalar_lea.vmem [#allocation7], %s2017_s5  ;;  %s2050_s9 = sshll.u32 %s1014_s24, 6 }
  0x84   : > { %v1573_v28 = vld [vmem:[#allocation5 + $0x250] ss:$24 sps:$4 sm:$0xff]   ;;  %v1581_v29 = vld [vmem:[#allocation5 + $0x284] ss:$24 sps:$4 sm:$0xff]   ;;  %s1017_s27 = sshll.u32 %s254_s25, 4  ;;  %s2058_s18 = scalar_lea.hbm %s2190_s2, %s2050_s9  ;;  %s2052_s27 = int_to_ptr.vmem [resolvable:$true] %s1017_s27 }
  0x85   : > { %869 = vmatpush1.bf16.msra.mxu0 %v1469_v22  ;;  %v1555_v22 = vld [vmem:[#allocation5 + $0x1c0] ss:$24 sps:$4 sm:$0xff]   ;;  %v1585_v32 = vld [vmem:[#allocation5 + $0x2b0] ss:$24 sps:$4 sm:$0xff]   ;;  %v1591_v33 = vld [vmem:[#allocation5 + $0x2e4] ss:$24 sps:$4 sm:$0xff]  }
  0x86   : > { %870 = vmatprep.subr.bf16.mxu0 %v1470_v23  ;;  %908 = vmatpush1.bf16.msra.mxu1 %v1534_v40  ;;  %v1563_v23 = vld [vmem:[#allocation5 + $0x1f4] ss:$24 sps:$4 sm:$0xff]   ;;  %s993_s19 = scalar_lea.sflag [#allocation4], %s2014_s28  ;;  %s1650_s4 = scalar_lea.vmem %s2052_s27, 128 }
  0x87   : > { %909 = vmatprep.subr.bf16.mxu1 %v1535_v41  ;;  %p1651_p8 = scmp.ne.s32.totalorder %s2052_s27, %s1650_s4  ;;  %s1818_s7 = smov [#allocation7]  }
  0x88   : > { %s1654_s26 = sshll.u32 %s1818_s7, 4  ;;  %s1655_s26 = int_to_ptr.vmem [resolvable:$false] %s1654_s26 }
  0x89   : > { %871 = vmatpush1.bf16.msra.mxu0 %v1472_v26  ;;  %v1567_v26 = vld [vmem:[#allocation5 + $0x220] ss:$24 sps:$4 sm:$0xff]   ;;  %p1652_p10 = pnand %p1651_p8, %p1952_p11  ;;  %s1656_s10 = scalar_lea.vmem %s1655_s26, 256 }
  0x8a   : > { %872 = vmatprep.subr.bf16.mxu0 %v1473_v27  ;;  %910 = vmatpush1.bf16.msra.mxu1 %v1540_v44  ;;  %v1575_v27 = vld [vmem:[#allocation5 + $0x254] ss:$24 sps:$4 sm:$0xff]   ;;  %p1657_p13 = scmp.lt.s32.totalorder %s2052_s27, %s1655_s26  ;;  %p1658_p3 = scmp.lt.s32.totalorder %s1656_s10, %s1650_s4 }
  0x8b   : > { %911 = vmatprep.subr.bf16.mxu1 %v1541_v45  ;;  %p1653_p12 = pneg %p1652_p10 }
  0x8c   : > { %p1659_p7 = por %p1658_p3, %p1657_p13 }
  0x8d   : > { %873 = vmatpush1.bf16.msra.mxu0 %v1475_v30  ;;  %v1579_v30 = vld [vmem:[#allocation5 + $0x280] ss:$24 sps:$4 sm:$0xff]  }
  0x8e   : > { %874 = vmatprep.subr.bf16.mxu0 %v1476_v31  ;;  %912 = vmatpush1.bf16.msra.mxu1 %v1546_v48  ;;  %v1587_v31 = vld [vmem:[#allocation5 + $0x2b4] ss:$24 sps:$4 sm:$0xff]   ;;  %p1660_p1 = pnand %p1659_p7, %p1653_p12 }
  0x8f   : > { %913 = vmatprep.subr.bf16.mxu1 %v1547_v49 }
  0x91   : > { %875 = vmatpush1.bf16.msra.mxu0 %v1478_v34  ;;  %v1589_v34 = vld [vmem:[#allocation5 + $0x2e0] ss:$24 sps:$4 sm:$0xff]  }
  0x92   : > { %876 = vmatprep.subr.bf16.mxu0 %v1479_v35  ;;  %914 = vmatpush1.bf16.msra.mxu1 %v1552_v52 }
  0x93   : > { %915 = vmatprep.subr.bf16.mxu1 %v1553_v53 }
  0x95   : > { %877 = vmatpush1.bf16.msra.mxu0 %v1481_v38 }
  0x96   : > { %878 = vmatprep.subr.bf16.mxu0 %v1482_v39  ;;  %916 = vmatpush1.bf16.msra.mxu1 %v1558_v56 }
  0x97   : > { %917 = vmatprep.subr.bf16.mxu1 %v1559_v57 }
  0x99   : > { %879 = vmatpush1.bf16.msra.mxu0 %v1484_v42 }
  0x9a   : > { %880 = vmatprep.subr.bf16.mxu0 %v1485_v43  ;;  %918 = vmatpush1.bf16.msra.mxu1 %v1564_v61 }
  0x9b   : > { %919 = vmatprep.subr.bf16.mxu1 %v1565_v62 }
  0x9d   : > { %881 = vmatpush1.bf16.msra.mxu0 %v1487_v46 }
  0x9e   : > { %882 = vmatprep.subr.bf16.mxu0 %v1488_v47  ;;  %920 = vmatpush1.bf16.msra.mxu1 %v1570_v1 }
  0x9f   : > { %921 = vmatprep.subr.bf16.mxu1 %v1571_v2 }
  0xa1   : > { %883 = vmatpush1.bf16.msra.mxu0 %v1490_v50 }
  0xa2   : > { %884 = vmatprep.subr.bf16.mxu0 %v1491_v51  ;;  %922 = vmatpush1.bf16.msra.mxu1 %v1576_v5 }
  0xa3   : > { %923 = vmatprep.subr.bf16.mxu1 %v1577_v6 }
  0xa5   : > { %885 = vmatpush1.bf16.msra.mxu0 %v1495_v54 }
  0xa6   : > { %936 = vmatprep.subr.bf16.mxu0 %v1503_v55  ;;  %924 = vmatpush1.bf16.msra.mxu1 %v1582_v9 }
  0xa7   : > { %925 = vmatprep.subr.bf16.mxu1 %v1583_v10 }
  0xa8   : > { %887 = vmatmul.mubr.bf16.vlgmr.msra.gmra.mrb[0].mxu0 %v2041_v58 }
  0xa9   : > { %937 = vmatpush1.bf16.msra.mxu0 %v1501_v59  ;;  %968 = vmatprep.mubr.bf16.mxu0 %v2035_v17  ;;  %v1545_v17 = vld [vmem:[#allocation5 + $0x164] ss:$24 sps:$4 sm:$0xff]  }
  0xaa   : > { %938 = vmatprep.subr.bf16.mxu0 %v1509_v60  ;;  %926 = vmatpush1.bf16.msra.mxu1 %v1588_v13 }
  0xad   : > { %939 = vmatpush1.bf16.msra.mxu0 %v1507_v63  ;;  %928 = vmatmul.mubr.bf16.vlgmr.msra.gmra.mrb[0].mxu1 %v2041_v58 }
  0xae   : > { %940 = vmatprep.subr.bf16.mxu0 %v1515_v0 }
  0xb1   : > { %941 = vmatpush1.bf16.msra.mxu0 %v1513_v3 }
  0xb2   : > { %942 = vmatprep.subr.bf16.mxu0 %v1521_v4 }
  0xb5   : > { %943 = vmatpush1.bf16.msra.mxu0 %v1519_v7 }
  0xb6   : > { %944 = vmatprep.subr.bf16.mxu0 %v1527_v8 }
  0xb9   : > { %945 = vmatpush1.bf16.msra.mxu0 %v1525_v11 }
  0xba   : > { %946 = vmatprep.subr.bf16.mxu0 %v1533_v12 }
  0xbd   : > { %947 = vmatpush1.bf16.msra.mxu0 %v1531_v14 }
  0xbe   : > { %948 = vmatprep.subr.bf16.mxu0 %v1539_v15 }
  0xc1   : > { %949 = vmatpush1.bf16.msra.mxu0 %v1537_v16 }
  0xc2   : > { %950 = vmatprep.subr.bf16.mxu0 %v1545_v17 }
  0xc5   : > { %951 = vmatpush1.bf16.msra.mxu0 %v1543_v18 }
  0xc6   : > { %952 = vmatprep.subr.bf16.mxu0 %v1551_v19 }
  0xc9   : > { %953 = vmatpush1.bf16.msra.mxu0 %v1549_v20 }
  0xca   : > { %954 = vmatprep.subr.bf16.mxu0 %v1557_v21 }
  0xcd   : > { %955 = vmatpush1.bf16.msra.mxu0 %v1555_v22 }
  0xce   : > { %956 = vmatprep.subr.bf16.mxu0 %v1563_v23 }
  0xd1   : > { %957 = vmatpush1.bf16.msra.mxu0 %v1561_v24 }
  0xd2   : > { %958 = vmatprep.subr.bf16.mxu0 %v1569_v25 }
  0xd5   : > { %959 = vmatpush1.bf16.msra.mxu0 %v1567_v26 }
  0xd6   : > { %960 = vmatprep.subr.bf16.mxu0 %v1575_v27 }
  0xd9   : > { %961 = vmatpush1.bf16.msra.mxu0 %v1573_v28 }
  0xda   : > { %962 = vmatprep.subr.bf16.mxu0 %v1581_v29 }
  0xdd   : > { %963 = vmatpush1.bf16.msra.mxu0 %v1579_v30 }
  0xde   : > { %964 = vmatprep.subr.bf16.mxu0 %v1587_v31 }
  0xe1   : > { %965 = vmatpush1.bf16.msra.mxu0 %v1585_v32 }
  0xe2   : > { %966 = vmatprep.subr.bf16.mxu0 %v1591_v33 }
  0xe5   : > { %967 = vmatpush1.bf16.msra.mxu0 %v1589_v34 }
  0xe8   : > { %969 = vmatmul.mubr.bf16.vlgmr.msra.gmra.mrb[4].mxu0 %v2041_v58 }
 0x17b   : > { %v888_v35 = vpop.f32.mrb[0].mxu0 }
 0x17c   : > { %v977_v36 = vpack.c.bf16 %v888_v35, %v888_v35  ;;  %v890_v37 = vpop.f32.mrb[1].mxu0 }
 0x17d   : > { %v983_v38 = vpack.c.bf16 %v890_v37, %v890_v37  ;;  %v892_v39 = vpop.f32.mrb[2].mxu0 }
 0x17e   : > { %978 = vst [vmem:[%s254_s25] sm:$0xf] %v977_v36  ;;  %v893_v40 = vpop.f32.mrb[3].mxu0 }
 0x17f   : > { %1328 = vst [vmem:[%s254_s25 + $0x4] sm:$0xf] %v983_v38 }
 0x180   : > { %1663 = shalt.err (!%p1660_p1)
}
 0x181   : > { %s1664_s12 = scalar_lea.hbm %s2058_s18, 128  ;;  %s1668_s11 = scalar_lea.hbm %s2190_s2, 512 }
 0x182   : > { %p1665_p2 = scmp.ne.s32.totalorder %s2058_s18, %s1664_s12  ;;  %p1669_p5 = scmp.lt.u32.totalorder %s2058_s18, %s2190_s2 }
 0x183   : > { %p1670_p0 = scmp.lt.u32.totalorder %s1668_s11, %s1664_s12  ;;  %p1672_p8 = scmp.lt.u32.totalorder %s1664_s12, %s2058_s18 }
 0x184   : > { %p1666_p4 = pnand %p1665_p2, %p1952_p11 }
 0x185   : > { %p1671_p6 = por %p1670_p0, %p1669_p5 }
 0x186   : > { %p1667_p9 = pneg %p1666_p4 }
 0x187   : > { %p1673_p10 = por %p1672_p8, %p1671_p6 }
 0x189   : > { %p1674_p12 = pnand %p1673_p10, %p1667_p9 }
 0x18b   : > { %1677 = shalt.err (!%p1674_p12)
}
 0x18c   : > { %s1819_s24 = smov 64   ;;  %s1820_s25 = smov 128   ;;  %v929_v41 = vpop.f32.mrb[0].mxu1 }
 0x18d   : > { %s1821_s8 = smov 4   ;;  %s261_s29 = scalar_lea.vmem [#allocation8], %s2017_s5  ;;  %v979_v42 = vpack.c.bf16 %v929_v41, %v929_v41  ;;  %v931_v43 = vpop.f32.mrb[1].mxu1 }
 0x18e   : > { %1348 = dma.vmem_to_hbm [thread:$0]  (%p1952_p11), %s2052_s27, 128, %s2058_s18, %s993_s19, %s1819_s24, %s1820_s25, %s1821_s8   ;;  %v986_v44 = vpack.c.bf16 %v931_v43, %v931_v43  ;;  %v933_v45 = vpop.f32.mrb[2].mxu1 }
 0x18f   : > { %s1034_s4 = sshll.u32 %s261_s29, 4  ;;  %s997_s7 = sand.u32 1, %s1890_s23   ;;  %980 = vst [vmem:[%s261_s29] sm:$0xf] %v979_v42  ;;  %v934_v46 = vpop.f32.mrb[3].mxu1  ;;  %s2089_s4 = int_to_ptr.vmem [resolvable:$true] %s1034_s4 }
 0x190   : > { %s2095_s12 = scalar_lea.hbm %s2191_s3, %s2050_s9  ;;  %1329 = vst [vmem:[%s261_s29 + $0x4] sm:$0xf] %v986_v44  ;;  %s2097_s28 = scalar_lea.sflag [#allocation9], %s997_s7 }
 0x191   : > { %s1678_s23 = scalar_lea.vmem %s2089_s4, 128  ;;  %s1822_s27 = smov [#allocation8]  }
 0x192   : > { %p1679_p13 = scmp.ne.s32.totalorder %s2089_s4, %s1678_s23  ;;  %s1682_s18 = sshll.u32 %s1822_s27, 4  ;;  %s1683_s18 = int_to_ptr.vmem [resolvable:$false] %s1682_s18 }
 0x193   : > { %s1684_s19 = scalar_lea.vmem %s1683_s18, 256  ;;  %p1685_p1 = scmp.lt.s32.totalorder %s2089_s4, %s1683_s18 }
 0x194   : > { %p1680_p3 = pnand %p1679_p13, %p1952_p11  ;;  %p1686_p2 = scmp.lt.s32.totalorder %s1684_s19, %s1678_s23 }
 0x196   : > { %p1681_p7 = pneg %p1680_p3  ;;  %p1687_p4 = por %p1686_p2, %p1685_p1 }
 0x198   : > { %p1688_p9 = pnand %p1687_p4, %p1681_p7 }
 0x19a   : > { %1691 = shalt.err (!%p1688_p9)
}
 0x19b   : > { %s1692_s13 = scalar_lea.hbm %s2095_s12, 128  ;;  %s1696_s6 = scalar_lea.hbm %s2191_s3, 512 }
 0x19c   : > { %p1693_p5 = scmp.ne.s32.totalorder %s2095_s12, %s1692_s13  ;;  %p1697_p8 = scmp.lt.u32.totalorder %s2095_s12, %s2191_s3 }
 0x19d   : > { %p1698_p10 = scmp.lt.u32.totalorder %s1696_s6, %s1692_s13  ;;  %p1700_p13 = scmp.lt.u32.totalorder %s1692_s13, %s2095_s12 }
 0x19e   : > { %p1694_p0 = pnand %p1693_p5, %p1952_p11 }
 0x19f   : > { %p1699_p12 = por %p1698_p10, %p1697_p8 }
 0x1a0   : > { %p1695_p6 = pneg %p1694_p0 }
 0x1a1   : > { %p1701_p3 = por %p1700_p13, %p1699_p12 }
 0x1a3   : > { %p1702_p7 = pnand %p1701_p3, %p1695_p6 }
 0x1a5   : > { %1705 = shalt.err (!%p1702_p7)
}
 0x1a6   : > { %1349 = dma.vmem_to_hbm [thread:$0]  (%p1952_p11), %s2089_s4, 128, %s2095_s12, %s2097_s28, %s1819_s24, %s1820_s25, %s1821_s8  }
 0x1a7   : > { %s268_s7 = scalar_lea.vmem [#allocation10], %s2017_s5  ;;  %s2221_s27 = sld [smem:[#allocation20_spill]] }
 0x1a8   : > { %s1051_s26 = sshll.u32 %s268_s7, 4  ;;  %s1823_s4 = smov [#allocation10]   ;;  %s2125_s26 = int_to_ptr.vmem [resolvable:$true] %s1051_s26 }
 0x1a9   : > { %s1706_s5 = scalar_lea.vmem %s2125_s26, 128  ;;  %s1710_s12 = sshll.u32 %s1823_s4, 4  ;;  %s1711_s12 = int_to_ptr.vmem [resolvable:$false] %s1710_s12 }
 0x1aa   : > { %p1707_p1 = scmp.ne.s32.totalorder %s2125_s26, %s1706_s5  ;;  %s1712_s19 = scalar_lea.vmem %s1711_s12, 256 }
 0x1ab   : > { %p1713_p9 = scmp.lt.s32.totalorder %s2125_s26, %s1711_s12  ;;  %p1714_p5 = scmp.lt.s32.totalorder %s1712_s19, %s1706_s5 }
 0x1ac   : > { %p1708_p2 = pnand %p1707_p1, %p1952_p11 }
 0x1ad   : > { %s2131_s18 = scalar_lea.hbm %s2221_s27, %s2050_s9  ;;  %p1715_p0 = por %p1714_p5, %p1713_p9 }
 0x1ae   : > { %p1709_p4 = pneg %p1708_p2 }
 0x1b0   : > { %p1716_p6 = pnand %p1715_p0, %p1709_p4 }
 0x1bb   : > { %v970_v47 = vpop.f32.mrb[4].mxu0 }
 0x1bc   : > { %v981_v48 = vpack.c.bf16 %v970_v47, %v970_v47  ;;  %v972_v49 = vpop.f32.mrb[5].mxu0 }
 0x1bd   : > { %v989_v50 = vpack.c.bf16 %v972_v49, %v972_v49  ;;  %v974_v51 = vpop.f32.mrb[6].mxu0 }
 0x1be   : > { %982 = vst [vmem:[%s268_s7] sm:$0xf] %v981_v48  ;;  %v975_v52 = vpop.f32.mrb[7].mxu0 }
 0x1bf   : > { %1330 = vst [vmem:[%s268_s7 + $0x4] sm:$0xf] %v989_v50 }
 0x1c0   : > { %1719 = shalt.err (!%p1716_p6)
}
 0x1c1   : > { %s1720_s9 = scalar_lea.hbm %s2131_s18, 128  ;;  %s1724_s11 = scalar_lea.hbm %s2221_s27, 512 }
 0x1c2   : > { %p1721_p8 = scmp.ne.s32.totalorder %s2131_s18, %s1720_s9  ;;  %p1725_p13 = scmp.lt.u32.totalorder %s2131_s18, %s2221_s27 }
 0x1c3   : > { %p1726_p3 = scmp.lt.u32.totalorder %s1724_s11, %s1720_s9  ;;  %p1728_p1 = scmp.lt.u32.totalorder %s1720_s9, %s2131_s18 }
 0x1c4   : > { %p1722_p10 = pnand %p1721_p8, %p1952_p11 }
 0x1c5   : > { %p1727_p7 = por %p1726_p3, %p1725_p13 }
 0x1c6   : > { %p1723_p12 = pneg %p1722_p10 }
 0x1c7   : > { %p1729_p2 = por %p1728_p1, %p1727_p7 }
 0x1c9   : > { %p1730_p4 = pnand %p1729_p2, %p1723_p12 }
 0x1cb   : > { %1733 = shalt.err (!%p1730_p4)
}
 0x1cc   : > { %1350 = dma.vmem_to_hbm [thread:$0]  (%p1952_p11), %s2125_s26, 128, %s2131_s18, %s2097_s28, %s1819_s24, %s1820_s25, %s1821_s8  }
 0x1cd PF: > { %s2222_s29 = sld [smem:[#allocation15_spill]]  ;;  %s2223_s7 = sld [smem:[#allocation16_spill]] }
 0x1ce   : > { %p1375_p9 = scmp.ge.s32.totalorder %s1812_s22, 2 }
 0x1d3   : > { %s1066_s10 = sand.u32 1, %s2222_s29   ;;  %p2224_p5 = scmp.ne.s32.totalorder %s2223_s7, 0 }
 0x1d4   : > { %s1067_s23 = scalar_lea.sflag [#allocation4], %s1066_s10 }
 0x1d5   : > { %p1363_p0 = pnand %p1375_p9, %p2224_p5 }
 0x1d7   : > { %1775 = dma.done.wait (!%p1363_p0), %s1067_s23, 128  }
 0x1d8   : > { %1777 = vsyncadd (!%p1363_p0), %s1067_s23, 4294967168  ;;  %s2225_s30 = sadd.s32 4294967294, %s1812_s22  }
 0x1d9   : > { %s1075_s5 = sand.u32 1, %s2225_s30  }
 0x1da   : > { %s1076_s4 = scalar_lea.sflag [#allocation9], %s1075_s5 }
 0x1db   : > { %1779 = dma.done.wait (!%p1363_p0), %s1076_s4, 256  }
 0x1dc   : > { %1781 = vsyncadd (!%p1363_p0), %s1076_s4, 4294967040  ;;  %s25_s22 = sadd.s32 1, %s1812_s22   ;;  %s2226_s24 = sld [smem:[#allocation17_spill]] }
 0x1dd   : > { %p22_p11 = scmp.ge.s32.totalorder %s25_s22, 6   ;;  %s2227_s25 = sld [smem:[#allocation18_spill]] }
 0x1de   : > { %s2228_s15 = smov %s1788_s16  ;;  %s2229_s16 = smov %s1792_s17 }
 0x1df   : > { %s2230_s17 = smov %s1969_s1  ;;  %s2231_s18 = smov %s1804_s20 }
 0x1e0   : > { %s2232_s19 = smov %s1808_s21  ;;  %24 = sbr.rel (!%p22_p11) target bundleno = 13 (0xd), region = 112 }
 0x1e2   : > { %s2233_s20 = smov %s2226_s24 }
 0x1e3   : > { %s2234_s21 = smov %s2227_s25 }
 0x1e7   :  { %1090 = vsyncpa [#allocation3], 1 }
 0x1e8   :  { %1092 = vsyncpa [#allocation3 + $0x1], 1 }
 0x1e9   :  { %1093 = vsyncpa [#allocation6], 1 }
 0x1ea   :  { %1094 = vsyncpa [#allocation4], 1 }
 0x1eb   :  { %1096 = vsyncpa [#allocation4 + $0x1], 1 }
 0x1ec   :  { %1097 = vsyncpa [#allocation9], 1 }
 0x1ed   :  { %1099 = vsyncpa [#allocation9 + $0x1], 1 }

</bundles_post_ra>
